<compile_context>
chip_gen: v5e
topology: v5e:2x2
jax: 0.10.0
libtpu: 0.0.40
codegen_flags: <defaults>
</compile_context>

<pallas_src>
import math

import jax
import jax.numpy as jnp
from jax.experimental import pallas as pl
from jax.experimental.pallas import tpu as pltpu

LANE = 128


def _round_up(n, m):
    return ((n + m - 1) // m) * m


# ----------------------------- Pallas kernel --------------------------------

def _make_mlp_kernel(n_blocks, residual_flags):
    """Kernel closure for a fixed (padded) topology.

    Ref order: x, W0, b0, [Wa_i, ba_i, Wb_i, bb_i]*n_blocks, Wout, bout, out.
    Weights are [in_pad, out_pad] (bf16), biases [1, out_pad] (f32).
    `residual_flags` are derived from the ORIGINAL (unpadded) widths, matching
    the PyTorch `x.shape == identity.shape` check.
    """

    def kernel(x_ref, w0_ref, b0_ref, *rest):
        out_ref = rest[-1]
        bout_ref = rest[-2]
        wout_ref = rest[-3]
        block_refs = rest[: 4 * n_blocks]

        # initial layer: Linear -> (folded BN) -> ReLU -> (Dropout = id)
        h = jnp.maximum(
            jnp.dot(x_ref[...], w0_ref[...],
                    preferred_element_type=jnp.float32) + b0_ref[...],
            0.0,
        )

        # residual blocks; activations carried as values (no scratch traffic)
        for i in range(n_blocks):
            wa, ba, wb, bb = block_refs[4 * i: 4 * i + 4]
            identity = h
            t = jnp.maximum(
                jnp.dot(h.astype(wa.dtype), wa[...],
                        preferred_element_type=jnp.float32) + ba[...],
                0.0,
            )
            t = jnp.maximum(
                jnp.dot(t.astype(wb.dtype), wb[...],
                        preferred_element_type=jnp.float32) + bb[...],
                0.0,
            )
            if residual_flags[i]:
                t = t + identity
            h = t

        # output head (padded to 128 lane-dense columns; col 0 is the real one)
        out_ref[...] = (
            jnp.dot(h.astype(wout_ref.dtype), wout_ref[...],
                    preferred_element_type=jnp.float32) + bout_ref[...]
        )

    return kernel


def plus_minus_forward_pallas(x, params, hidden_layers, *, block_b=128):
    """Fused MLP forward.  x: [B, input_size] f32 -> [B, 1] f32."""
    B, f_in = x.shape
    n_blocks = len(hidden_layers) - 1
    residual_flags = [hidden_layers[i] == hidden_layers[i + 1]
                      for i in range(n_blocks)]

    in_pad = params["w0"].shape[0]
    widths = [params["w0"].shape[1]] + \
             [params[f"wb{i}"].shape[1] for i in range(n_blocks)]
    out_pad = params["wout"].shape[1]
    w_dtype = params["w0"].dtype

    # batch tile: multiple of 8 (sublane), pipelined over the grid
    tb = _round_up(min(block_b, _round_up(B, 8)), 8)
    b_pad = _round_up(B, tb)

    # pre-cast x to the weight dtype (bf16): halves streaming DMA, same math
    # as casting inside the kernel.
    x_pad = jnp.zeros((b_pad, in_pad), w_dtype)
    x_pad = x_pad.at[:B, :f_in].set(x.astype(w_dtype))

    operands = [x_pad, params["w0"], params["b0"]]
    for i in range(n_blocks):
        operands += [params[f"wa{i}"], params[f"ba{i}"],
                     params[f"wb{i}"], params[f"bb{i}"]]
    operands += [params["wout"], params["bout"]]

    # weights/biases: constant index_map -> DMA'd once, VMEM-resident
    def resident_spec(a):
        return pl.BlockSpec(a.shape, lambda i: (0, 0))

    in_specs = [pl.BlockSpec((tb, in_pad), lambda i: (i, 0))] + \
               [resident_spec(a) for a in operands[1:]]
    out_specs = pl.BlockSpec((tb, out_pad), lambda i: (i, 0))
    out_shape = jax.ShapeDtypeStruct((b_pad, out_pad), jnp.float32)

    # cost estimate hint for XLA's scheduler
    dims = [(in_pad, widths[0])]
    for i in range(n_blocks):
        dims += [(widths[i], widths[i + 1]), (widths[i + 1], widths[i + 1])]
    dims += [(widths[-1], out_pad)]
    flops = 2 * b_pad * sum(k * n for k, n in dims)
    bytes_accessed = sum(int(a.size) * a.dtype.itemsize for a in operands)
    bytes_accessed += b_pad * out_pad * 4

    kernel = _make_mlp_kernel(n_blocks, residual_flags)

    y = pl.pallas_call(
        kernel,
        grid=(b_pad // tb,),
        in_specs=in_specs,
        out_specs=out_specs,
        out_shape=out_shape,
        compiler_params=pltpu.CompilerParams(
            dimension_semantics=("parallel",),   # 2x from 2nd TC on v7x
            vmem_limit_bytes=32 * 1024 * 1024,   # safe on v5e/v6e/v7x
        ),
        cost_estimate=pl.CostEstimate(
            flops=int(flops), transcendentals=0,
            bytes_accessed=int(bytes_accessed)),
    )(*operands)

    return y[:B, :1]


# ------------------------- parameter construction ---------------------------

def _init_linear(key, fan_in, fan_out):
    # PyTorch default Linear init: U(-1/sqrt(fan_in), 1/sqrt(fan_in))
    kw, kb = jax.random.split(key)
    bound = 1.0 / math.sqrt(fan_in)
    w = jax.random.uniform(kw, (fan_out, fan_in), jnp.float32, -bound, bound)
    b = jax.random.uniform(kb, (fan_out,), jnp.float32, -bound, bound)
    return w, b


def _init_bn(key, n):
    kg, kb, km, kv = jax.random.split(key, 4)
    gamma = 1.0 + 0.1 * jax.random.normal(kg, (n,), jnp.float32)
    beta = 0.1 * jax.random.normal(kb, (n,), jnp.float32)
    mean = 0.1 * jax.random.normal(km, (n,), jnp.float32)
    var = 1.0 + 0.1 * jax.random.uniform(kv, (n,), jnp.float32)
    return gamma, beta, mean, var


def _fold(w, b, gamma, beta, mean, var, eps=1e-5):
    """Fold Linear (y = x W^T + b) followed by eval-mode BatchNorm1d into a
    single affine: returns W' as [in, out] and b' as [1, out] (both f32)."""
    scale = gamma / jnp.sqrt(var + eps)          # [out]
    w_f = w * scale[:, None]                     # [out, in]
    b_f = b * scale + beta - mean * scale        # [out]
    return w_f.T, b_f[None, :]


def _pad2(a, rows, cols):
    out = jnp.zeros((rows, cols), jnp.float32)
    return out.at[: a.shape[0], : a.shape[1]].set(a)


def build_params(key, input_size, hidden_layers, weight_dtype=jnp.bfloat16):
    """Fold Linear+BN, zero-pad all feature dims to 128 lanes, cast weights."""
    n_blocks = len(hidden_layers) - 1
    params = {}
    keys = jax.random.split(key, 4 * len(hidden_layers) + 4)
    k_iter = iter(keys)

    in_pad = _round_up(input_size, LANE)
    h_pad = [_round_up(h, LANE) for h in hidden_layers]

    # initial layer
    w, b = _init_linear(next(k_iter), input_size, hidden_layers[0])
    g, be, m, v = _init_bn(next(k_iter), hidden_layers[0])
    wf, bf = _fold(w, b, g, be, m, v)
    params["w0"] = _pad2(wf, in_pad, h_pad[0]).astype(weight_dtype)
    params["b0"] = _pad2(bf, 1, h_pad[0])

    # residual blocks
    for i in range(n_blocks):
        h_in, h_out = hidden_layers[i], hidden_layers[i + 1]
        w, b = _init_linear(next(k_iter), h_in, h_out)
        g, be, m, v = _init_bn(next(k_iter), h_out)
        wf, bf = _fold(w, b, g, be, m, v)
        params[f"wa{i}"] = _pad2(wf, h_pad[i], h_pad[i + 1]).astype(weight_dtype)
        params[f"ba{i}"] = _pad2(bf, 1, h_pad[i + 1])

        w, b = _init_linear(next(k_iter), h_out, h_out)
        g, be, m, v = _init_bn(next(k_iter), h_out)
        wf, bf = _fold(w, b, g, be, m, v)
        params[f"wb{i}"] = _pad2(wf, h_pad[i + 1], h_pad[i + 1]).astype(weight_dtype)
        params[f"bb{i}"] = _pad2(bf, 1, h_pad[i + 1])

    # output head (no BN); padded to 128 lane-dense columns, real one is col 0
    w, b = _init_linear(next(k_iter), hidden_layers[-1], 1)
    params["wout"] = _pad2(w.T, h_pad[-1], LANE).astype(weight_dtype)
    params["bout"] = _pad2(b[None, :], 1, LANE)
    return params


# ----------------------------- JAX reference ---------------------------------

def reference_forward(x_pad, params, hidden_layers):
    """Same math path (bf16 inputs, f32 accumulation) on padded params."""
    n_blocks = len(hidden_layers) - 1

    def dense(h, w, b, relu):
        y = jnp.dot(h.astype(w.dtype), w,
                    preferred_element_type=jnp.float32) + b
        return jnp.maximum(y, 0.0) if relu else y

    h = dense(x_pad, params["w0"], params["b0"], True)
    for i in range(n_blocks):
        identity = h
        h = dense(h, params[f"wa{i}"], params[f"ba{i}"], True)
        h = dense(h, params[f"wb{i}"], params[f"bb{i}"], True)
        if hidden_layers[i] == hidden_layers[i + 1]:
            h = h + identity
    return dense(h, params["wout"], params["bout"], False)[:, :1]


# --------------------------------- main --------------------------------------

if __name__ == "__main__":
    input_size = 16
    hidden_layers = [32, 32, 16]   # first block has residual add, second does not
    batch = 50                     # not a multiple of the tile -> exercises padding
    block_b = 32                   # 2 grid steps over the batch

    key = jax.random.PRNGKey(0)
    k_params, k_x = jax.random.split(key)
    params = build_params(k_params, input_size, hidden_layers,
                          weight_dtype=jnp.bfloat16)
    x = jax.random.normal(k_x, (batch, input_size), jnp.float32)

    out = plus_minus_forward_pallas(x, params, hidden_layers, block_b=block_b)
    out = jax.block_until_ready(out)

    in_pad = params["w0"].shape[0]
    x_pad = jnp.zeros((batch, in_pad), jnp.bfloat16).at[:, :input_size].set(
        x.astype(jnp.bfloat16))
    ref = reference_forward(x_pad, params, hidden_layers)

    assert out.shape == (batch, 1)
    assert jnp.allclose(out, ref, atol=1e-3, rtol=1e-3), "mismatch vs JAX reference"

    # TODO(synk): training-mode BatchNorm (batch statistics) and Dropout are not
    # implemented; this kernel targets inference with folded running stats.
    print("KERNEL_OK")
</pallas_src>

<mosaic_0001>
module attributes {stable_mosaic.version = 11 : i64} {
  func.func @kernel(%arg0: i32, %arg1: memref<32x128xbf16, #tpu.memory_space<vmem>>, %arg2: memref<128x128xbf16, #tpu.memory_space<vmem>>, %arg3: memref<1x128xf32, #tpu.memory_space<vmem>>, %arg4: memref<128x128xbf16, #tpu.memory_space<vmem>>, %arg5: memref<1x128xf32, #tpu.memory_space<vmem>>, %arg6: memref<128x128xbf16, #tpu.memory_space<vmem>>, %arg7: memref<1x128xf32, #tpu.memory_space<vmem>>, %arg8: memref<128x128xbf16, #tpu.memory_space<vmem>>, %arg9: memref<1x128xf32, #tpu.memory_space<vmem>>, %arg10: memref<128x128xbf16, #tpu.memory_space<vmem>>, %arg11: memref<1x128xf32, #tpu.memory_space<vmem>>, %arg12: memref<128x128xbf16, #tpu.memory_space<vmem>>, %arg13: memref<1x128xf32, #tpu.memory_space<vmem>>, %arg14: memref<32x128xf32, #tpu.memory_space<vmem>>) attributes {dimension_semantics = [#tpu.dimension_semantics<parallel>], iteration_bounds = array<i64: 2>, scalar_prefetch = 0 : i64, scratch_operands = 0 : i64, tpu.core_type = #tpu.core_type<tc>, window_params = [{transform_indices = @transform_0, window_bounds = array<i64: 32, 128>}, {pipeline_mode = #tpu.pipeline_mode<synchronous>, transform_indices = @transform_1, window_bounds = array<i64: 128, 128>}, {pipeline_mode = #tpu.pipeline_mode<synchronous>, transform_indices = @transform_2, window_bounds = array<i64: 1, 128>}, {pipeline_mode = #tpu.pipeline_mode<synchronous>, transform_indices = @transform_3, window_bounds = array<i64: 128, 128>}, {pipeline_mode = #tpu.pipeline_mode<synchronous>, transform_indices = @transform_4, window_bounds = array<i64: 1, 128>}, {pipeline_mode = #tpu.pipeline_mode<synchronous>, transform_indices = @transform_5, window_bounds = array<i64: 128, 128>}, {pipeline_mode = #tpu.pipeline_mode<synchronous>, transform_indices = @transform_6, window_bounds = array<i64: 1, 128>}, {pipeline_mode = #tpu.pipeline_mode<synchronous>, transform_indices = @transform_7, window_bounds = array<i64: 128, 128>}, {pipeline_mode = #tpu.pipeline_mode<synchronous>, transform_indices = @transform_8, window_bounds = array<i64: 1, 128>}, {pipeline_mode = #tpu.pipeline_mode<synchronous>, transform_indices = @transform_9, window_bounds = array<i64: 128, 128>}, {pipeline_mode = #tpu.pipeline_mode<synchronous>, transform_indices = @transform_10, window_bounds = array<i64: 1, 128>}, {pipeline_mode = #tpu.pipeline_mode<synchronous>, transform_indices = @transform_11, window_bounds = array<i64: 128, 128>}, {pipeline_mode = #tpu.pipeline_mode<synchronous>, transform_indices = @transform_12, window_bounds = array<i64: 1, 128>}, {transform_indices = @transform_13, window_bounds = array<i64: 32, 128>}]} {
    %c0 = arith.constant 0 : index
    %c0_0 = arith.constant 0 : index
    %0 = vector.load %arg1[%c0, %c0_0] : memref<32x128xbf16, #tpu.memory_space<vmem>>, vector<32x128xbf16>
    %c0_1 = arith.constant 0 : index
    %c0_2 = arith.constant 0 : index
    %1 = vector.load %arg2[%c0_1, %c0_2] : memref<128x128xbf16, #tpu.memory_space<vmem>>, vector<128x128xbf16>
    %cst = arith.constant dense<0.000000e+00> : vector<32x128xf32>
    %2 = tpu.matmul %0, %1, %cst {dimension_numbers = #tpu.dot_dimension_numbers<[1], [0], [0], [1], [0, 0, 1, 1], [], []>} : vector<32x128xbf16>, vector<128x128xbf16>, vector<32x128xf32> -> vector<32x128xf32>
    %c0_3 = arith.constant 0 : index
    %c0_4 = arith.constant 0 : index
    %3 = vector.load %arg3[%c0_3, %c0_4] : memref<1x128xf32, #tpu.memory_space<vmem>>, vector<1x128xf32>
    %4 = vector.broadcast %3 : vector<1x128xf32> to vector<32x128xf32>
    %5 = arith.addf %2, %4 : vector<32x128xf32>
    %cst_5 = arith.constant 0.000000e+00 : f32
    %6 = vector.broadcast %cst_5 : f32 to vector<32x128xf32>
    %7 = arith.maximumf %5, %6 : vector<32x128xf32>
    %8 = arith.truncf %7 : vector<32x128xf32> to vector<32x128xbf16>
    %c0_6 = arith.constant 0 : index
    %c0_7 = arith.constant 0 : index
    %9 = vector.load %arg4[%c0_6, %c0_7] : memref<128x128xbf16, #tpu.memory_space<vmem>>, vector<128x128xbf16>
    %cst_8 = arith.constant dense<0.000000e+00> : vector<32x128xf32>
    %10 = tpu.matmul %8, %9, %cst_8 {dimension_numbers = #tpu.dot_dimension_numbers<[1], [0], [0], [1], [0, 0, 1, 1], [], []>} : vector<32x128xbf16>, vector<128x128xbf16>, vector<32x128xf32> -> vector<32x128xf32>
    %c0_9 = arith.constant 0 : index
    %c0_10 = arith.constant 0 : index
    %11 = vector.load %arg5[%c0_9, %c0_10] : memref<1x128xf32, #tpu.memory_space<vmem>>, vector<1x128xf32>
    %12 = vector.broadcast %11 : vector<1x128xf32> to vector<32x128xf32>
    %13 = arith.addf %10, %12 : vector<32x128xf32>
    %cst_11 = arith.constant 0.000000e+00 : f32
    %14 = vector.broadcast %cst_11 : f32 to vector<32x128xf32>
    %15 = arith.maximumf %13, %14 : vector<32x128xf32>
    %16 = arith.truncf %15 : vector<32x128xf32> to vector<32x128xbf16>
    %c0_12 = arith.constant 0 : index
    %c0_13 = arith.constant 0 : index
    %17 = vector.load %arg6[%c0_12, %c0_13] : memref<128x128xbf16, #tpu.memory_space<vmem>>, vector<128x128xbf16>
    %cst_14 = arith.constant dense<0.000000e+00> : vector<32x128xf32>
    %18 = tpu.matmul %16, %17, %cst_14 {dimension_numbers = #tpu.dot_dimension_numbers<[1], [0], [0], [1], [0, 0, 1, 1], [], []>} : vector<32x128xbf16>, vector<128x128xbf16>, vector<32x128xf32> -> vector<32x128xf32>
    %c0_15 = arith.constant 0 : index
    %c0_16 = arith.constant 0 : index
    %19 = vector.load %arg7[%c0_15, %c0_16] : memref<1x128xf32, #tpu.memory_space<vmem>>, vector<1x128xf32>
    %20 = vector.broadcast %19 : vector<1x128xf32> to vector<32x128xf32>
    %21 = arith.addf %18, %20 : vector<32x128xf32>
    %cst_17 = arith.constant 0.000000e+00 : f32
    %22 = vector.broadcast %cst_17 : f32 to vector<32x128xf32>
    %23 = arith.maximumf %21, %22 : vector<32x128xf32>
    %24 = arith.addf %23, %7 : vector<32x128xf32>
    %25 = arith.truncf %24 : vector<32x128xf32> to vector<32x128xbf16>
    %c0_18 = arith.constant 0 : index
    %c0_19 = arith.constant 0 : index
    %26 = vector.load %arg8[%c0_18, %c0_19] : memref<128x128xbf16, #tpu.memory_space<vmem>>, vector<128x128xbf16>
    %cst_20 = arith.constant dense<0.000000e+00> : vector<32x128xf32>
    %27 = tpu.matmul %25, %26, %cst_20 {dimension_numbers = #tpu.dot_dimension_numbers<[1], [0], [0], [1], [0, 0, 1, 1], [], []>} : vector<32x128xbf16>, vector<128x128xbf16>, vector<32x128xf32> -> vector<32x128xf32>
    %c0_21 = arith.constant 0 : index
    %c0_22 = arith.constant 0 : index
    %28 = vector.load %arg9[%c0_21, %c0_22] : memref<1x128xf32, #tpu.memory_space<vmem>>, vector<1x128xf32>
    %29 = vector.broadcast %28 : vector<1x128xf32> to vector<32x128xf32>
    %30 = arith.addf %27, %29 : vector<32x128xf32>
    %cst_23 = arith.constant 0.000000e+00 : f32
    %31 = vector.broadcast %cst_23 : f32 to vector<32x128xf32>
    %32 = arith.maximumf %30, %31 : vector<32x128xf32>
    %33 = arith.truncf %32 : vector<32x128xf32> to vector<32x128xbf16>
    %c0_24 = arith.constant 0 : index
    %c0_25 = arith.constant 0 : index
    %34 = vector.load %arg10[%c0_24, %c0_25] : memref<128x128xbf16, #tpu.memory_space<vmem>>, vector<128x128xbf16>
    %cst_26 = arith.constant dense<0.000000e+00> : vector<32x128xf32>
    %35 = tpu.matmul %33, %34, %cst_26 {dimension_numbers = #tpu.dot_dimension_numbers<[1], [0], [0], [1], [0, 0, 1, 1], [], []>} : vector<32x128xbf16>, vector<128x128xbf16>, vector<32x128xf32> -> vector<32x128xf32>
    %c0_27 = arith.constant 0 : index
    %c0_28 = arith.constant 0 : index
    %36 = vector.load %arg11[%c0_27, %c0_28] : memref<1x128xf32, #tpu.memory_space<vmem>>, vector<1x128xf32>
    %37 = vector.broadcast %36 : vector<1x128xf32> to vector<32x128xf32>
    %38 = arith.addf %35, %37 : vector<32x128xf32>
    %cst_29 = arith.constant 0.000000e+00 : f32
    %39 = vector.broadcast %cst_29 : f32 to vector<32x128xf32>
    %40 = arith.maximumf %38, %39 : vector<32x128xf32>
    %41 = arith.truncf %40 : vector<32x128xf32> to vector<32x128xbf16>
    %c0_30 = arith.constant 0 : index
    %c0_31 = arith.constant 0 : index
    %42 = vector.load %arg12[%c0_30, %c0_31] : memref<128x128xbf16, #tpu.memory_space<vmem>>, vector<128x128xbf16>
    %cst_32 = arith.constant dense<0.000000e+00> : vector<32x128xf32>
    %43 = tpu.matmul %41, %42, %cst_32 {dimension_numbers = #tpu.dot_dimension_numbers<[1], [0], [0], [1], [0, 0, 1, 1], [], []>} : vector<32x128xbf16>, vector<128x128xbf16>, vector<32x128xf32> -> vector<32x128xf32>
    %c0_33 = arith.constant 0 : index
    %c0_34 = arith.constant 0 : index
    %44 = vector.load %arg13[%c0_33, %c0_34] : memref<1x128xf32, #tpu.memory_space<vmem>>, vector<1x128xf32>
    %45 = vector.broadcast %44 : vector<1x128xf32> to vector<32x128xf32>
    %46 = arith.addf %43, %45 : vector<32x128xf32>
    %c0_35 = arith.constant 0 : index
    %c0_36 = arith.constant 0 : index
    %47 = vector.load %arg14[%c0_35, %c0_36] : memref<32x128xf32, #tpu.memory_space<vmem>>, vector<32x128xf32>
    tpu.vector_store %arg14[%c0_35, %c0_36], %46 {strides = array<i32>} : memref<32x128xf32, #tpu.memory_space<vmem>>, vector<32x128xf32>,
    return
  }
  func.func @transform_0(%arg0: i32) -> (i32, i32) {
    %c0_i32 = arith.constant 0 : i32
    %c0_i32_0 = arith.constant 0 : i32
    return %arg0, %c0_i32 : i32, i32
  }
  func.func @transform_1(%arg0: i32) -> (i32, i32) {
    %c0_i32 = arith.constant 0 : i32
    %c0_i32_0 = arith.constant 0 : i32
    %c0_i32_1 = arith.constant 0 : i32
    return %c0_i32, %c0_i32_0 : i32, i32
  }
  func.func @transform_2(%arg0: i32) -> (i32, i32) {
    %c0_i32 = arith.constant 0 : i32
    %c0_i32_0 = arith.constant 0 : i32
    %c0_i32_1 = arith.constant 0 : i32
    return %c0_i32, %c0_i32_0 : i32, i32
  }
  func.func @transform_3(%arg0: i32) -> (i32, i32) {
    %c0_i32 = arith.constant 0 : i32
    %c0_i32_0 = arith.constant 0 : i32
    %c0_i32_1 = arith.constant 0 : i32
    return %c0_i32, %c0_i32_0 : i32, i32
  }
  func.func @transform_4(%arg0: i32) -> (i32, i32) {
    %c0_i32 = arith.constant 0 : i32
    %c0_i32_0 = arith.constant 0 : i32
    %c0_i32_1 = arith.constant 0 : i32
    return %c0_i32, %c0_i32_0 : i32, i32
  }
  func.func @transform_5(%arg0: i32) -> (i32, i32) {
    %c0_i32 = arith.constant 0 : i32
    %c0_i32_0 = arith.constant 0 : i32
    %c0_i32_1 = arith.constant 0 : i32
    return %c0_i32, %c0_i32_0 : i32, i32
  }
  func.func @transform_6(%arg0: i32) -> (i32, i32) {
    %c0_i32 = arith.constant 0 : i32
    %c0_i32_0 = arith.constant 0 : i32
    %c0_i32_1 = arith.constant 0 : i32
    return %c0_i32, %c0_i32_0 : i32, i32
  }
  func.func @transform_7(%arg0: i32) -> (i32, i32) {
    %c0_i32 = arith.constant 0 : i32
    %c0_i32_0 = arith.constant 0 : i32
    %c0_i32_1 = arith.constant 0 : i32
    return %c0_i32, %c0_i32_0 : i32, i32
  }
  func.func @transform_8(%arg0: i32) -> (i32, i32) {
    %c0_i32 = arith.constant 0 : i32
    %c0_i32_0 = arith.constant 0 : i32
    %c0_i32_1 = arith.constant 0 : i32
    return %c0_i32, %c0_i32_0 : i32, i32
  }
  func.func @transform_9(%arg0: i32) -> (i32, i32) {
    %c0_i32 = arith.constant 0 : i32
    %c0_i32_0 = arith.constant 0 : i32
    %c0_i32_1 = arith.constant 0 : i32
    return %c0_i32, %c0_i32_0 : i32, i32
  }
  func.func @transform_10(%arg0: i32) -> (i32, i32) {
    %c0_i32 = arith.constant 0 : i32
    %c0_i32_0 = arith.constant 0 : i32
    %c0_i32_1 = arith.constant 0 : i32
    return %c0_i32, %c0_i32_0 : i32, i32
  }
  func.func @transform_11(%arg0: i32) -> (i32, i32) {
    %c0_i32 = arith.constant 0 : i32
    %c0_i32_0 = arith.constant 0 : i32
    %c0_i32_1 = arith.constant 0 : i32
    return %c0_i32, %c0_i32_0 : i32, i32
  }
  func.func @transform_12(%arg0: i32) -> (i32, i32) {
    %c0_i32 = arith.constant 0 : i32
    %c0_i32_0 = arith.constant 0 : i32
    %c0_i32_1 = arith.constant 0 : i32
    return %c0_i32, %c0_i32_0 : i32, i32
  }
  func.func @transform_13(%arg0: i32) -> (i32, i32) {
    %c0_i32 = arith.constant 0 : i32
    %c0_i32_0 = arith.constant 0 : i32
    return %arg0, %c0_i32 : i32, i32
  }
}

</mosaic_0001>

<bundles_post_ra>
// kernel: tpu_custom_call.1
= control target key start
LH: loop header
LB: loop body
LE: loop exit
PB: predicated region body
PF: predicated region fallthrough
CT: control target
= control target key end

     0   :  { %s2318_s0 = inlined_call_operand.hbm [shape: bf16[64,128], index: 0, kind: input, shape index: {}]   ;;  %s2319_s1 = inlined_call_operand.hbm [shape: bf16[128,128], index: 1, kind: input, shape index: {}]   ;;  %s2320_s2 = inlined_call_operand.vmem [shape: f32[1,128], index: 2, kind: input, shape index: {}]   ;;  %s2321_s3 = inlined_call_operand.hbm [shape: bf16[128,128], index: 3, kind: input, shape index: {}]   ;;  %s2322_s4 = inlined_call_operand.vmem [shape: f32[1,128], index: 4, kind: input, shape index: {}]   ;;  %s2323_s5 = inlined_call_operand.hbm [shape: bf16[128,128], index: 5, kind: input, shape index: {}]   ;;  %s2324_s6 = inlined_call_operand.vmem [shape: f32[1,128], index: 6, kind: input, shape index: {}]   ;;  %s2325_s7 = inlined_call_operand.hbm [shape: bf16[128,128], index: 7, kind: input, shape index: {}]   ;;  %s2326_s8 = inlined_call_operand.vmem [shape: f32[1,128], index: 8, kind: input, shape index: {}]   ;;  %s2327_s9 = inlined_call_operand.hbm [shape: bf16[128,128], index: 9, kind: input, shape index: {}]   ;;  %s2328_s10 = inlined_call_operand.vmem [shape: f32[1,128], index: 10, kind: input, shape index: {}]   ;;  %s2329_s11 = inlined_call_operand.hbm [shape: bf16[128,128], index: 11, kind: input, shape index: {}]   ;;  %s2330_s12 = inlined_call_operand.vmem [shape: f32[1,128], index: 12, kind: input, shape index: {}]   ;;  %s2331_s13 = inlined_call_operand.hbm [shape: f32[64,128], index: 13, kind: output, shape index: {}]  }
   0x1   :  { %2335 = sst [smem:[#allocation21_spill]] %s2319_s1 }
   0x2   :  { %2336 = sst [smem:[#allocation22_spill]] %s2321_s3 }
   0x3   :  { %2337 = sst [smem:[#allocation23_spill]] %s2323_s5 }
   0x4   :  { %2338 = sst [smem:[#allocation24_spill]] %s2325_s7 }
   0x5   :  { %2339 = sst [smem:[#allocation25_spill]] %s2327_s9 }
   0x6   :  { %2340 = sst [smem:[#allocation26_spill]] %s2329_s11 }
   0x7   :  { %2341 = sst [smem:[#allocation27_spill]] %s2331_s13 }
   0x8   :  { %18 = vsyncpa [#allocation3], 0 }
   0x9   :  { %20 = vsyncpa [#allocation3 + $0x1], 0 }
   0xa   :  { %21 = vsyncpa [#allocation6], 0 }
   0xb   :  { %22 = vsyncpa [#allocation9], 0 }
   0xc   :  { %23 = vsyncpa [#allocation12], 0 }
   0xd   :  { %24 = vsyncpa [#allocation4], 0 }
   0xe   :  { %26 = vsyncpa [#allocation4 + $0x1], 0  ;;  %s2065_s25 = smov 0   ;;  %s2067_s26 = smov 0  }
   0xf   :  { %s2069_s27 = smov 0   ;;  %s2071_s28 = smov 0  }
  0x10 LB: > { %s2342_s1 = sld [smem:[#allocation21_spill]]  ;;  %s2089_s15 = sadd.s32 4294967295, %s1983_s28   ;;  %s1983_s28 = sphi %s2071_s28, %s2364_s28   ;;  %s1979_s27 = sphi %s2069_s27, %s2363_s27   ;;  %s1975_s26 = sphi %s2067_s26, %s2362_s26   ;;  %s1971_s25 = sphi %s2065_s25, %s2361_s25  }
  0x11   : > { %p1285_p0 = scmp.ge.s32.totalorder %s1983_s28, 1  ;;  %p53_p1 = scmp.eq.s32.totalorder %s2089_s15, 0 }
  0x12   : > { %p341_p2 = scmp.lt.s32.totalorder %s1983_s28, 3  ;;  %s1985_s17 = smov [#allocation5]  }
  0x13   : > { %s354_s18 = sshll.u32 %s1985_s17, 4  ;;  %s2344_s5 = sld [smem:[#allocation23_spill]]  ;;  %s355_s18 = int_to_ptr.vmem [resolvable:$true] %s354_s18 }
  0x14   : > { %p2094_p3 = pnand %p1285_p0, %p341_p2  ;;  %s2346_s9 = sld [smem:[#allocation25_spill]] }
  0x15   : > { %s1986_s30 = smov [#allocation8]   ;;  %s2334_s13 = smov 4  }
  0x16   : > { %s352_s14 = sshll.u32 %s2342_s1, 4  ;;  %p1606_p4 = pneg %p2094_p3  ;;  %s353_s14 = int_to_ptr.hbm [resolvable:$true] %s352_s14 }
  0x17   : > { %s388_s17 = sshll.u32 %s1986_s30, 4  ;;  %s2333_s1 = smov 64   ;;  %s389_s17 = int_to_ptr.vmem [resolvable:$true] %s388_s17 }
  0x18   : > { %p2106_p6 = pnand %p1606_p4, %p53_p1  ;;  %s2347_s3 = sld [smem:[#allocation22_spill]] }
  0x19   : > { %s386_s21 = sshll.u32 %s2344_s5, 4  ;;  %s1989_s24 = smov [#allocation11]   ;;  %s387_s21 = int_to_ptr.hbm [resolvable:$true] %s386_s21 }
  0x1a   : > { %s420_s29 = sshll.u32 %s2346_s9, 4  ;;  %s422_s30 = sshll.u32 %s1989_s24, 4  ;;  %s421_s29 = int_to_ptr.hbm [resolvable:$true] %s420_s29  ;;  %s423_s30 = int_to_ptr.vmem [resolvable:$true] %s422_s30 }
  0x1b   : > { %1609 = dma.hbm_to_vmem [thread:$0]  (!%p2106_p6), %s353_s14, 1024, %s355_s18, [#allocation6], %s2333_s1, %s2333_s1, %s2334_s13  }
  0x1c   : > { %1615 = dma.hbm_to_vmem [thread:$0]  (!%p2106_p6), %s387_s21, 1024, %s389_s17, [#allocation9], %s2333_s1, %s2333_s1, %s2334_s13  }
  0x1d   : > { %1621 = dma.hbm_to_vmem [thread:$0]  (!%p2106_p6), %s421_s29, 1024, %s423_s30, [#allocation12], %s2333_s1, %s2333_s1, %s2334_s13  }
  0x1e   : > { %s369_s23 = sshll.u32 %s2347_s3, 4  ;;  %s1990_s14 = smov [#allocation7]   ;;  %s370_s23 = int_to_ptr.hbm [resolvable:$true] %s369_s23 }
  0x1f   : > { %s371_s18 = sshll.u32 %s1990_s14, 4  ;;  %s2348_s7 = sld [smem:[#allocation24_spill]]  ;;  %s372_s18 = int_to_ptr.vmem [resolvable:$true] %s371_s18 }
  0x20   : > { %1612 = dma.hbm_to_vmem [thread:$0]  (!%p2106_p6), %s370_s23, 1024, %s372_s18, [#allocation6], %s2333_s1, %s2333_s1, %s2334_s13  }
  0x21   : > { %s2349_s11 = sld [smem:[#allocation26_spill]]  ;;  %s1991_s24 = smov [#allocation10]  }
  0x22   : > { %s405_s5 = sshll.u32 %s1991_s24, 4  ;;  %s1992_s23 = smov [#allocation13]   ;;  %s406_s5 = int_to_ptr.vmem [resolvable:$true] %s405_s5 }
  0x23   : > { %s439_s30 = sshll.u32 %s1992_s23, 4  ;;  %s1284_s14 = sadd.s32 4294967294, %s1983_s28   ;;  %s440_s30 = int_to_ptr.vmem [resolvable:$true] %s439_s30 }
  0x24   : > { %s2154_s18 = sadd.s32 1, %s1983_s28   ;;  %s39_s19 = sadd.s32 1, %s1979_s27 }
  0x25   : > { %s403_s17 = sshll.u32 %s2348_s7, 4  ;;  %s36_s21 = ssub.s32 %s1983_s28, %s2154_s18  ;;  %s404_s17 = int_to_ptr.hbm [resolvable:$true] %s403_s17 }
  0x26   : > { %1618 = dma.hbm_to_vmem [thread:$0]  (!%p2106_p6), %s404_s17, 1024, %s406_s5, [#allocation9], %s2333_s1, %s2333_s1, %s2334_s13  }
  0x27   : > { %s437_s20 = sshll.u32 %s2349_s11, 4  ;;  %p37_p7 = scmp.eq.s32.totalorder %s36_s21, 0  ;;  %s438_s20 = int_to_ptr.hbm [resolvable:$true] %s437_s20 }
  0x28   : > { %1624 = dma.hbm_to_vmem [thread:$0]  (!%p2106_p6), %s438_s20, 1024, %s440_s30, [#allocation12], %s2333_s1, %s2333_s1, %s2334_s13  }
  0x29   : > { %p46_p8 = scmp.ne.s32.totalorder %s1979_s27, %s1975_s26  ;;  %p47_p9 = scmp.eq.s32.totalorder %s1983_s28, 0 }
  0x2a   : > { %p52_p10 = scmp.ne.s32.totalorder %s1975_s26, %s1971_s25  ;;  %p328_p13 = scmp.eq.s32.totalorder %s2089_s15, 1 }
  0x2b   : > { %s2165_s17 = scalar_select %p37_p7, %s1979_s27, %s39_s19  }
  0x2c   : > { %p2167_p11 = por %p47_p9, %p46_p8  ;;  %p2173_p12 = por %p53_p1, %p52_p10 }
  0x2d   : > { %2350 = sst [smem:[#allocation20_spill]] %s2165_s17  ;;  %p334_p0 = scmp.eq.s32.totalorder %s1284_s14, 1 }
  0x2e   : > { %p1639_p2 = scmp.lt.s32.totalorder %s1983_s28, 2  ;;  %s456_s20 = sand.u32 1, %s1979_s27  }
  0x2f   : > { %p2180_p4 = por %p328_p13, %p46_p8  ;;  %p2184_p6 = por %p334_p0, %p52_p10 }
  0x30   : > { %s1293_s23 = sshll.u32 %s456_s20, 4  ;;  %s1510_s30 = sshll.u32 %s1983_s28, 4 }
  0x31   : > { %s465_s1 = scalar_lea.hbm %s2318_s0, %s1510_s30  ;;  %s460_s13 = scalar_lea.vmem [#allocation2], %s1293_s23 }
  0x32   : > { %s468_s3 = sshll.u32 %s460_s13, 4  ;;  %s466_s7 = sshll.u32 %s465_s1, 4  ;;  %s469_s3 = int_to_ptr.vmem [resolvable:$true] %s468_s3  ;;  %s467_s7 = int_to_ptr.hbm [resolvable:$true] %s466_s7 }
  0x33   : > { %p2194_p7 = pnand %p1639_p2, %p2167_p11  ;;  %s457_s9 = scalar_lea.sflag [#allocation3], %s456_s20 }
  0x34   : > { %s1875_s11 = sshra.s32 %s467_s7, 4  ;;  %s1882_s1 = scalar_lea.hbm %s2318_s0, 32  ;;  %s1876_s11 = int_to_ptr.hbm [resolvable:$true] %s1875_s11 }
  0x35   : > { %s1877_s17 = scalar_lea.hbm %s1876_s11, 16  ;;  %p1879_p9 = pneg %p2194_p7 }
  0x36   : > { %p1878_p8 = scmp.ne.s32.totalorder %s1876_s11, %s1877_s17  ;;  %p1883_p11 = scmp.lt.s32.totalorder %s1876_s11, %s2318_s0 }
  0x37   : > { %p1884_p0 = scmp.lt.s32.totalorder %s1882_s1, %s1877_s17 }
  0x38   : > { %p1880_p10 = pnand %p1879_p9, %p1878_p8 }
  0x39   : > { %p1885_p2 = por %p1884_p0, %p1883_p11 }
  0x3a   : > { %p1881_p13 = pneg %p1880_p10 }
  0x3c   : > { %p1886_p5 = pnand %p1885_p2, %p1881_p13 }
  0x3e   : > { %1889 = shalt.err (!%p1886_p5)
}
  0x3f   : > { %s2356_s20 = smov 4   ;;  %s2357_s21 = smov 64  }
  0x40   : > { %1628 = dma.hbm_to_vmem [thread:$0]  (!%p2194_p7), %s467_s7, 256, %s469_s3, %s457_s9, %s2357_s21, %s2357_s21, %s2356_s20  }
  0x41   : > { %480 = sbr.rel (%p2094_p3) target bundleno = 991 (0x3df), region = 72  ;;  %s2214_s19 = sand.u32 (!%p2094_p3), 1, %s1975_s26  }
  0x42   : > { %s1297_s11 = sshll.u32 (!%p2094_p3), %s2214_s19, 4  ;;  %s483_s17 = scalar_lea.sflag (!%p2094_p3), [#allocation3], %s2214_s19 }
  0x43   : > { %s2218_s23 = scalar_lea.vmem (!%p2094_p3), [#allocation2], %s1297_s11 }
  0x46   : > { %1950 = dma.done.wait (%p2173_p12), %s483_s17, 256  }
  0x47   : > { %1952 = vsyncadd (%p2173_p12), %s483_s17, 4294967040 }
  0x48   : > { %1954 = dma.done.wait (%p53_p1), [#allocation6], 2048  }
  0x49   : > { %1956 = vsyncadd (%p53_p1), [#allocation6], 4294965248 }
  0x4a   : > { %1958 = dma.done.wait (%p53_p1), [#allocation9], 2048  }
  0x4b   : > { %1960 = vsyncadd (%p53_p1), [#allocation9], 4294965248 }
  0x4c   : > { %1962 = dma.done.wait (%p53_p1), [#allocation12], 2048  }
  0x4d   : > { %1964 = vsyncadd (%p53_p1), [#allocation12], 4294965248  ;;  %v1520_v0 = vld [vmem:[#allocation5 + $0x38] sm:$0xff]  ;;  %v1519_v1 = vld [vmem:[#allocation5 + $0x30] sm:$0xff]  ;;  %s1304_s20 = sshll.u32 %s2214_s19, 5  ;;  %s2358_s9 = sld [smem:[#allocation27_spill]] }
  0x4e   : > { %646 = vmatpush.bf16.msra.mxu0 %v1520_v0  ;;  %v1518_v2 = vld [vmem:[#allocation5 + $0x28] sm:$0xff]  ;;  %v1517_v3 = vld [vmem:[#allocation5 + $0x20] sm:$0xff]  ;;  %v1516_v4 = vld [vmem:[#allocation5 + $0x18] sm:$0xff]  ;;  %s559_s17 = scalar_lea.vmem [#allocation14], %s1304_s20  ;;  %s1139_s13 = scalar_lea.sflag [#allocation4], %s2214_s19 }
  0x4f   : > { %v1528_v5 = vld [vmem:[#allocation7 + $0x38] sm:$0xff]  ;;  %v1515_v6 = vld [vmem:[#allocation5 + $0x10] sm:$0xff]  ;;  %v1514_v8 = vld [vmem:[#allocation5 + $0x8] sm:$0xff]  ;;  %s1151_s29 = sshll.u32 %s559_s17, 4  ;;  %s1152_s29 = int_to_ptr.vmem [resolvable:$true] %s1151_s29 }
  0x50   : > { %739 = vmatpush.bf16.msra.mxu1 %v1528_v5  ;;  %v1527_v7 = vld [vmem:[#allocation7 + $0x30] sm:$0xff]  ;;  %v1526_v9 = vld [vmem:[#allocation7 + $0x28] sm:$0xff]  ;;  %v1513_v10 = vld [vmem:[#allocation5] sm:$0xff] }
  0x51   : > { %v1525_v11 = vld [vmem:[#allocation7 + $0x20] sm:$0xff]  ;;  %v1512_v13 = vld [vmem:[%s2218_s23 + $0x8] sm:$0xff]  ;;  %v1523_v15 = vld [vmem:[#allocation7 + $0x10] sm:$0xff] }
  0x52   : > { %647 = vmatpush.bf16.msra.mxu0 %v1519_v1  ;;  %v1511_v12 = vld [vmem:[%s2218_s23] sm:$0xff]  ;;  %v1524_v14 = vld [vmem:[#allocation7 + $0x18] sm:$0xff]  ;;  %v1522_v16 = vld [vmem:[#allocation7 + $0x8] sm:$0xff]  ;;  %s1561_s23 = sshll.u32 %s2089_s15, 5 }
  0x53   : > { %v1521_v17 = vld [vmem:[#allocation7] sm:$0xff]  ;;  %v1536_v18 = vld [vmem:[#allocation8 + $0x38] sm:$0xff]  ;;  %v1535_v20 = vld [vmem:[#allocation8 + $0x30] sm:$0xff]  ;;  %s1150_s16 = scalar_lea.hbm %s2358_s9, %s1561_s23  ;;  %s1925_s20 = scalar_lea.hbm %s2358_s9, 64 }
  0x54   : > { %740 = vmatpush.bf16.msra.mxu1 %v1527_v7  ;;  %832 = vmatpush.bf16.msra.mxu2 %v1536_v18  ;;  %v1689_v21 = vld [vmem:[%s2320_s2] ss:$0 sm:$0xff]  ;;  %v1534_v22 = vld [vmem:[#allocation8 + $0x28] sm:$0xff]  ;;  %v1532_v37 = vld [vmem:[#allocation8 + $0x18] sm:$0xff]  ;;  %s1153_s14 = sshll.u32 %s1150_s16, 4  ;;  %s1154_s14 = int_to_ptr.hbm [resolvable:$true] %s1153_s14 }
  0x55   : > { %v1533_v26 = vld [vmem:[#allocation8 + $0x20] sm:$0xff]  ;;  %v1531_v38 = vld [vmem:[#allocation8 + $0x10] sm:$0xff]  ;;  %v1530_v39 = vld [vmem:[#allocation8 + $0x8] sm:$0xff]  ;;  %s1919_s1 = sshra.s32 %s1154_s14, 4  ;;  %s1920_s1 = int_to_ptr.hbm [resolvable:$true] %s1919_s1 }
  0x56   : > { %648 = vmatpush.bf16.msra.mxu0 %v1518_v2  ;;  %v1529_v40 = vld [vmem:[#allocation8] sm:$0xff]  ;;  %v1544_v41 = vld [vmem:[#allocation10 + $0x38] sm:$0xff]  ;;  %v1543_v43 = vld [vmem:[#allocation10 + $0x30] sm:$0xff]  ;;  %s1921_s30 = scalar_lea.hbm %s1920_s1, 32  ;;  %p1926_p12 = scmp.lt.s32.totalorder %s1920_s1, %s2358_s9 }
  0x57   : > { %929 = vmatpush.bf16.msra.mxu3 %v1544_v41  ;;  %v1690_v44 = vld [vmem:[%s2322_s4] ss:$0 sm:$0xff]  ;;  %v1542_v45 = vld [vmem:[#allocation10 + $0x28] sm:$0xff]  ;;  %v1540_v60 = vld [vmem:[#allocation10 + $0x18] sm:$0xff]  ;;  %p1922_p1 = scmp.ne.s32.totalorder %s1920_s1, %s1921_s30  ;;  %p1927_p7 = scmp.lt.s32.totalorder %s1925_s20, %s1921_s30 }
  0x58   : > { %741 = vmatpush.bf16.msra.mxu1 %v1526_v9  ;;  %833 = vmatpush.bf16.msra.mxu2 %v1535_v20  ;;  %v1541_v49 = vld [vmem:[#allocation10 + $0x20] sm:$0xff]  ;;  %v1539_v61 = vld [vmem:[#allocation10 + $0x10] sm:$0xff]  ;;  %v1538_v62 = vld [vmem:[#allocation10 + $0x8] sm:$0xff] }
  0x59   : > { %v1537_v63 = vld [vmem:[#allocation10] sm:$0xff]  ;;  %v1552_v2 = vld [vmem:[#allocation11 + $0x38] sm:$0xff]  ;;  %v1550_v5 = vld [vmem:[#allocation11 + $0x28] sm:$0xff]  ;;  %p1923_p3 = pnand %p1922_p1, %p2180_p4  ;;  %p1928_p8 = por %p1927_p7, %p1926_p12 }
  0x5a   : > { %649 = vmatpush.bf16.msra.mxu0 %v1517_v3  ;;  %v1691_v1 = vld [vmem:[%s2324_s6] ss:$0 sm:$0xff]  ;;  %v1551_v3 = vld [vmem:[#allocation11 + $0x30] sm:$0xff] }
  0x5b   : > { %930 = vmatpush.bf16.msra.mxu3 %v1543_v43  ;;  %p1924_p5 = pneg %p1923_p3 }
  0x5c   : > { %742 = vmatpush.bf16.msra.mxu1 %v1525_v11  ;;  %834 = vmatpush.bf16.msra.mxu2 %v1534_v22 }
  0x5d   : > { %p1929_p9 = pnand %p1928_p8, %p1924_p5 }
  0x5e   : > { %650 = vmatpush.bf16.msra.mxu0 %v1516_v4 }
  0x5f   : > { %931 = vmatpush.bf16.msra.mxu3 %v1542_v45 }
  0x60   : > { %743 = vmatpush.bf16.msra.mxu1 %v1524_v14  ;;  %835 = vmatpush.bf16.msra.mxu2 %v1533_v26  ;;  %v1545_v26 = vld [vmem:[#allocation11] sm:$0xff] }
  0x62   : > { %651 = vmatpush.bf16.msra.mxu0 %v1515_v6 }
  0x63   : > { %932 = vmatpush.bf16.msra.mxu3 %v1541_v49  ;;  %v1553_v49 = vld [vmem:[#allocation13] sm:$0xff] }
  0x64   : > { %744 = vmatpush.bf16.msra.mxu1 %v1523_v15  ;;  %836 = vmatpush.bf16.msra.mxu2 %v1532_v37 }
  0x66   : > { %652 = vmatpush.bf16.msra.mxu0 %v1514_v8 }
  0x67   : > { %933 = vmatpush.bf16.msra.mxu3 %v1540_v60 }
  0x68   : > { %745 = vmatpush.bf16.msra.mxu1 %v1522_v16  ;;  %837 = vmatpush.bf16.msra.mxu2 %v1531_v38 }
  0x6a   : > { %653 = vmatpush.bf16.msra.mxu0 %v1513_v10  ;;  %v1549_v10 = vld [vmem:[#allocation11 + $0x20] sm:$0xff] }
  0x6b   : > { %934 = vmatpush.bf16.msra.mxu3 %v1539_v61 }
  0x6c   : > { %746 = vmatpush.bf16.msra.mxu1 %v1521_v17  ;;  %838 = vmatpush.bf16.msra.mxu2 %v1530_v39 }
  0x6d   : > { %654 = vmatmul.bf16.vlgmr.msra.gmra.mxu0 %v1511_v12 }
  0x6e   : > { %1022 = vmatpush.bf16.msrb.mxu0 %v1552_v2 }
  0x6f   : > { %935 = vmatpush.bf16.msra.mxu3 %v1538_v62 }
  0x70   : > { %839 = vmatpush.bf16.msra.mxu2 %v1529_v40 }
  0x72   : > { %1023 = vmatpush.bf16.msrb.mxu0 %v1551_v3 }
  0x73   : > { %936 = vmatpush.bf16.msra.mxu3 %v1537_v63 }
  0x74   : > { %1562 = vmatpush.bf16.msrb.mxu2 %v1552_v2 }
  0x76   : > { %1024 = vmatpush.bf16.msrb.mxu0 %v1550_v5 }
  0x78   : > { %1563 = vmatpush.bf16.msrb.mxu2 %v1551_v3 }
  0x7a   : > { %1025 = vmatpush.bf16.msrb.mxu0 %v1549_v10 }
  0x7c   : > { %1564 = vmatpush.bf16.msrb.mxu2 %v1550_v5 }
  0x7d   : > { %659 = vmatmul.bf16.gmra.mxu0 %v1512_v13 }
  0x80   : > { %1565 = vmatpush.bf16.msrb.mxu2 %v1549_v10 }
  0xea   : > { %v655_v19 = vpop.f32.mrf.mxu0 }
  0xeb   : > { %v2241_v23 = vadd.f32 %v1689_v21, %v655_v19 }
  0xed   : > { %v665_v27 = vmax.f32 %v2241_v23, 0.0  ;;  %v1548_v23 = vld [vmem:[#allocation11 + $0x18] sm:$0xff] }
  0xee   : > { %1026 = vmatpush.bf16.msrb.mxu0 %v1548_v23  ;;  %1566 = vmatpush.bf16.msrb.mxu2 %v1548_v23 }
  0xf2   : > { %v657_v24 = vpop.f32.mrf.mxu0 }
  0xf3   : > { %v2243_v25 = vadd.f32 %v1689_v21, %v657_v24  ;;  %v1547_v24 = vld [vmem:[#allocation11 + $0x10] sm:$0xff] }
  0xf4   : > { %1027 = vmatpush.bf16.msrb.mxu0 %v1547_v24  ;;  %1567 = vmatpush.bf16.msrb.mxu2 %v1547_v24 }
  0xf5   : > { %v666_v28 = vmax.f32 %v2243_v25, 0.0  ;;  %v1546_v25 = vld [vmem:[#allocation11 + $0x8] sm:$0xff] }
  0xf7   : > { %v669_v29 = vpack.c.bf16 %v666_v28, %v665_v27 }
  0xf8   : > { %1028 = vmatpush.bf16.msrb.mxu0 %v1546_v25  ;;  %1568 = vmatpush.bf16.msrb.mxu2 %v1546_v25 }
  0xf9   : > { %747 = vmatmul.bf16.vlgmr.msra.gmra.mxu1 %v669_v29  ;;  %v1559_v29 = vld [vmem:[#allocation13 + $0x30] sm:$0xff] }
  0xfa   : > { %v660_v30 = vpop.f32.mrf.mxu0 }
  0xfb   : > { %v2251_v31 = vadd.f32 %v1689_v21, %v660_v30  ;;  %v1692_v30 = vld [vmem:[%s2326_s8] ss:$0 sm:$0xff] }
  0xfc   : > { %1029 = vmatpush.bf16.msrb.mxu0 %v1545_v26  ;;  %1569 = vmatpush.bf16.msrb.mxu2 %v1545_v26 }
  0xfd   : > { %v667_v34 = vmax.f32 %v2251_v31, 0.0  ;;  %v1558_v31 = vld [vmem:[#allocation13 + $0x28] sm:$0xff] }
 0x102   : > { %v662_v32 = vpop.f32.mrf.mxu0 }
 0x103   : > { %v2253_v33 = vadd.f32 %v1689_v21, %v662_v32 }
 0x105   : > { %v668_v35 = vmax.f32 %v2253_v33, 0.0 }
 0x107   : > { %v670_v36 = vpack.c.bf16 %v668_v35, %v667_v34 }
 0x109   : > { %752 = vmatmul.bf16.gmra.mxu1 %v670_v36 }
 0x176   : > { %v748_v42 = vpop.f32.mrf.mxu1 }
 0x177   : > { %v749_v46 = vadd.f32 %v1690_v44, %v748_v42 }
 0x179   : > { %v758_v50 = vmax.f32 %v749_v46, 0.0  ;;  %v1556_v46 = vld [vmem:[#allocation13 + $0x18] sm:$0xff] }
 0x17e   : > { %v750_v47 = vpop.f32.mrf.mxu1 }
 0x17f   : > { %v751_v48 = vadd.f32 %v1690_v44, %v750_v47  ;;  %v1555_v47 = vld [vmem:[#allocation13 + $0x10] sm:$0xff] }
 0x181   : > { %v759_v51 = vmax.f32 %v751_v48, 0.0  ;;  %v1554_v48 = vld [vmem:[#allocation13 + $0x8] sm:$0xff] }
 0x183   : > { %v762_v52 = vpack.c.bf16 %v759_v51, %v758_v50  ;;  %v1693_v51 = vld [vmem:[%s2328_s10] ss:$0 sm:$0xff] }
 0x185   : > { %840 = vmatmul.bf16.vlgmr.msra.gmra.mxu2 %v762_v52 }
 0x186   : > { %v753_v53 = vpop.f32.mrf.mxu1 }
 0x187   : > { %v754_v54 = vadd.f32 %v1690_v44, %v753_v53 }
 0x189   : > { %v760_v57 = vmax.f32 %v754_v54, 0.0 }
 0x18e   : > { %v755_v55 = vpop.f32.mrf.mxu1 }
 0x18f   : > { %v756_v56 = vadd.f32 %v1690_v44, %v755_v55 }
 0x191   : > { %v761_v58 = vmax.f32 %v756_v56, 0.0 }
 0x193   : > { %v763_v59 = vpack.c.bf16 %v761_v58, %v760_v57 }
 0x195   : > { %845 = vmatmul.bf16.gmra.mxu2 %v763_v59 }
 0x208   : > { %v841_v0 = vpop.f32.mrf.mxu2 }
 0x209   : > { %v842_v4 = vadd.f32 %v1691_v1, %v841_v0 }
 0x20b   : > { %v851_v7 = vmax.f32 %v842_v4, 0.0 }
 0x20d   : > { %v855_v11 = vadd.f32 %v851_v7, %v665_v27  ;;  %v1560_v27 = vld [vmem:[#allocation13 + $0x38] sm:$0xff] }
 0x20e   : > { %1115 = vmatpush.bf16.msrb.mxu1 %v1560_v27  ;;  %1570 = vmatpush.bf16.msrb.mxu3 %v1560_v27 }
 0x210   : > { %v843_v6 = vpop.f32.mrf.mxu2 }
 0x211   : > { %v844_v8 = vadd.f32 %v1691_v1, %v843_v6 }
 0x212   : > { %1116 = vmatpush.bf16.msrb.mxu1 %v1559_v29  ;;  %1571 = vmatpush.bf16.msrb.mxu3 %v1559_v29 }
 0x213   : > { %v852_v9 = vmax.f32 %v844_v8, 0.0 }
 0x215   : > { %v856_v12 = vadd.f32 %v852_v9, %v666_v28 }
 0x216   : > { %1117 = vmatpush.bf16.msrb.mxu1 %v1558_v31  ;;  %1572 = vmatpush.bf16.msrb.mxu3 %v1558_v31 }
 0x217   : > { %v859_v13 = vpack.c.bf16 %v856_v12, %v855_v11 }
 0x218   : > { %v846_v14 = vpop.f32.mrf.mxu2 }
 0x219   : > { %937 = vmatmul.bf16.vlgmr.msra.gmra.mxu3 %v859_v13  ;;  %v847_v15 = vadd.f32 %v1691_v1, %v846_v14 }
 0x21b   : > { %v853_v17 = vmax.f32 %v847_v15, 0.0 }
 0x21d   : > { %v857_v20 = vadd.f32 %v853_v17, %v667_v34 }
 0x220   : > { %v848_v16 = vpop.f32.mrf.mxu2 }
 0x221   : > { %v849_v18 = vadd.f32 %v1691_v1, %v848_v16  ;;  %v1694_v1 = vld [vmem:[%s2330_s12] ss:$0 sm:$0xff] }
 0x223   : > { %v854_v19 = vmax.f32 %v849_v18, 0.0 }
 0x225   : > { %v858_v21 = vadd.f32 %v854_v19, %v668_v35  ;;  %v1557_v35 = vld [vmem:[#allocation13 + $0x20] sm:$0xff] }
 0x226   : > { %1118 = vmatpush.bf16.msrb.mxu1 %v1557_v35  ;;  %1573 = vmatpush.bf16.msrb.mxu3 %v1557_v35 }
 0x227   : > { %v860_v22 = vpack.c.bf16 %v858_v21, %v857_v20 }
 0x229   : > { %942 = vmatmul.bf16.gmra.mxu3 %v860_v22 }
 0x22a   : > { %1119 = vmatpush.bf16.msrb.mxu1 %v1556_v46  ;;  %1574 = vmatpush.bf16.msrb.mxu3 %v1556_v46 }
 0x22e   : > { %1120 = vmatpush.bf16.msrb.mxu1 %v1555_v47  ;;  %1575 = vmatpush.bf16.msrb.mxu3 %v1555_v47 }
 0x232   : > { %1121 = vmatpush.bf16.msrb.mxu1 %v1554_v48  ;;  %1576 = vmatpush.bf16.msrb.mxu3 %v1554_v48 }
 0x236   : > { %1122 = vmatpush.bf16.msrb.mxu1 %v1553_v49  ;;  %1577 = vmatpush.bf16.msrb.mxu3 %v1553_v49 }
 0x29c   : > { %v938_v28 = vpop.f32.mrf.mxu3 }
 0x29d   : > { %v939_v32 = vadd.f32 %v1692_v30, %v938_v28 }
 0x29f   : > { %v948_v36 = vmax.f32 %v939_v32, 0.0 }
 0x2a4   : > { %v940_v33 = vpop.f32.mrf.mxu3 }
 0x2a5   : > { %v941_v34 = vadd.f32 %v1692_v30, %v940_v33 }
 0x2a7   : > { %v949_v37 = vmax.f32 %v941_v34, 0.0 }
 0x2a9   : > { %v952_v38 = vpack.c.bf16 %v949_v37, %v948_v36 }
 0x2ab   : > { %1030 = vmatmul.bf16.vlgmr.msrb.gmra.mxu0 %v952_v38 }
 0x2ac   : > { %v943_v39 = vpop.f32.mrf.mxu3 }
 0x2ad   : > { %v944_v40 = vadd.f32 %v1692_v30, %v943_v39 }
 0x2af   : > { %v950_v43 = vmax.f32 %v944_v40, 0.0 }
 0x2b4   : > { %v945_v41 = vpop.f32.mrf.mxu3 }
 0x2b5   : > { %v946_v42 = vadd.f32 %v1692_v30, %v945_v41 }
 0x2b7   : > { %v951_v44 = vmax.f32 %v946_v42, 0.0 }
 0x2b9   : > { %v953_v45 = vpack.c.bf16 %v951_v44, %v950_v43 }
 0x2bb   : > { %1035 = vmatmul.bf16.vlgmr.msrb.gmra.mxu2 %v953_v45 }
 0x328   : > { %v1031_v50 = vpop.f32.mrf.mxu0 }
 0x329   : > { %v1032_v52 = vadd.f32 %v1693_v51, %v1031_v50 }
 0x32b   : > { %v1041_v55 = vmax.f32 %v1032_v52, 0.0 }
 0x330   : > { %v1033_v53 = vpop.f32.mrf.mxu0 }
 0x331   : > { %v1034_v54 = vadd.f32 %v1693_v51, %v1033_v53 }
 0x333   : > { %v1042_v56 = vmax.f32 %v1034_v54, 0.0 }
 0x335   : > { %v1045_v57 = vpack.c.bf16 %v1042_v56, %v1041_v55 }
 0x337   : > { %1123 = vmatmul.bf16.vlgmr.msrb.gmra.mxu1 %v1045_v57 }
 0x33e   : > { %v1036_v58 = vpop.f32.mrf.mxu2 }
 0x33f   : > { %v1037_v59 = vadd.f32 %v1693_v51, %v1036_v58 }
 0x341   : > { %v1043_v62 = vmax.f32 %v1037_v59, 0.0 }
 0x346   : > { %v1038_v60 = vpop.f32.mrf.mxu2 }
 0x347   : > { %v1039_v61 = vadd.f32 %v1693_v51, %v1038_v60 }
 0x349   : > { %v1044_v63 = vmax.f32 %v1039_v61, 0.0 }
 0x34b   : > { %v1046_v0 = vpack.c.bf16 %v1044_v63, %v1043_v62 }
 0x34d   : > { %1128 = vmatmul.bf16.vlgmr.msrb.gmra.mxu3 %v1046_v0 }
 0x3b4   : > { %v1124_v2 = vpop.f32.mrf.mxu1 }
 0x3b5   : > { %v1125_v3 = vadd.f32 %v1694_v1, %v1124_v2 }
 0x3b7   : > { %1134 = vst [vmem:[%s559_s17] sm:$0xff] %v1125_v3 }
 0x3bc   : > { %v1126_v4 = vpop.f32.mrf.mxu1 }
 0x3bd   : > { %v1127_v5 = vadd.f32 %v1694_v1, %v1126_v4 }
 0x3bf   : > { %1135 = vst [vmem:[%s559_s17 + $0x8] sm:$0xff] %v1127_v5 }
 0x3d0   : > { %v1129_v6 = vpop.f32.mrf.mxu3 }
 0x3d1   : > { %v1130_v7 = vadd.f32 %v1694_v1, %v1129_v6 }
 0x3d3   : > { %1136 = vst [vmem:[%s559_s17 + $0x10] sm:$0xff] %v1130_v7 }
 0x3d8   : > { %v1131_v8 = vpop.f32.mrf.mxu3 }
 0x3d9   : > { %v1132_v9 = vadd.f32 %v1694_v1, %v1131_v8 }
 0x3db   : > { %1137 = vst [vmem:[%s559_s17 + $0x18] sm:$0xff] %v1132_v9 }
 0x3dc   : > { %1932 = shalt.err (!%p1929_p9)
}
 0x3dd   : > { %s1993_s19 = smov 128   ;;  %s1994_s17 = smov 8  }
 0x3de   : > { %1604 = dma.vmem_to_hbm [thread:$0]  (%p2180_p4), %s1152_s29, 512, %s1154_s14, %s1139_s13, %s1993_s19, %s1993_s19, %s1994_s17  }
 0x3df PF: > { %s1168_s23 = sand.u32 1, %s1971_s25   ;;  %p2359_p10 = scmp.ge.s32.totalorder %s1983_s28, 2 }
 0x3e0   : > { %s1169_s3 = scalar_lea.sflag [#allocation4], %s1168_s23 }
 0x3e1   : > { %p1630_p13 = pnand %p2359_p10, %p2184_p6 }
 0x3e3   : > { %p1631_p11 = pneg %p1630_p13 }
 0x3e5   : > { %1966 = dma.done.wait (%p1631_p11), %s1169_s3, 512  }
 0x3e6   : > { %1968 = vsyncadd (%p1631_p11), %s1169_s3, 4294966784  ;;  %s2360_s7 = sld [smem:[#allocation20_spill]]  ;;  %p29_p0 = scmp.ge.s32.totalorder %s2154_s18, 4  }
 0x3e7   : > { %s2361_s25 = smov %s1975_s26  ;;  %s2362_s26 = smov %s1979_s27 }
 0x3e8   : > { %s2364_s28 = smov %s2154_s18  ;;  %31 = sbr.rel (!%p29_p0) target bundleno = 16 (0x10), region = 141 }
 0x3ec   : > { %s2363_s27 = smov %s2360_s7 }
 0x3ed   :  { %1175 = vsyncpa [#allocation3], 1 }
 0x3ee   :  { %1177 = vsyncpa [#allocation3 + $0x1], 1 }
 0x3ef   :  { %1178 = vsyncpa [#allocation6], 1 }
 0x3f0   :  { %1179 = vsyncpa [#allocation9], 1 }
 0x3f1   :  { %1180 = vsyncpa [#allocation12], 1 }
 0x3f2   :  { %1181 = vsyncpa [#allocation4], 1 }
 0x3f3   :  { %1183 = vsyncpa [#allocation4 + $0x1], 1 }

</bundles_post_ra>
